<compile_context>
chip_gen: v7x
topology: tpu7x:2x2x1
jax: 0.10.0
libtpu: 0.0.40
codegen_flags: <defaults>
</compile_context>

<pallas_src>
import jax
import jax.numpy as jnp
import numpy as np
from jax.experimental import pallas as pl
from jax.experimental.pallas import tpu as pltpu

SEQ_LEN = 16
PRED_LEN = 8
ENC_IN = 4
CYCLE_LEN = 7
MOVING_AVG = 5          # odd kernel size for series_decomp (replicate padding) — only
                        # used by the pure-JAX reference; it cancels in the forward.
EPS = 1e-5
LANE = 128
TILE_MAX = 2048         # upper bound on lanes per grid step (working set stays tiny)


def cycletrend_kernel(x_ref, cq_ref, w_ref, o_ref):
    # x_ref:  (S,   TILE_N) time-major slab covering TILE_N (batch, channel) columns.
    # cq_ref: (S+P, TILE_N) fused cycle slab; rows [S:] already carry the doubled bias.
    x = x_ref[...].astype(jnp.float32)

    # --- RevIN normalize: per-column (per batch*channel) stats over the time axis ---
    means = jnp.mean(x, axis=0, keepdims=True)               # (1, TN)
    xc = x - means
    var = jnp.mean(xc * xc, axis=0, keepdims=True)           # biased (unbiased=False)
    inv = jax.lax.rsqrt(var + EPS)                           # EUP; avoids VPU divide
    stdev = (var + EPS) * inv                                # == sqrt(var + EPS)

    # --- subtract recurrent-cycle component for the input window ---
    cq_seq = cq_ref[pl.ds(0, SEQ_LEN), :].astype(jnp.float32)            # (S, TN)
    xq = xc * inv - cq_seq

    # --- collapsed decomposition + linear heads ---
    # series_decomp followed by the SAME linear head on trend and resid reduces to
    #   W @ xq + 2*b   (2*b is pre-folded into the prediction-window cycle rows)
    y = jnp.dot(w_ref[...].astype(jnp.float32), xq,
                preferred_element_type=jnp.float32)          # (P, TN) — MXU
    y = y + cq_ref[pl.ds(SEQ_LEN, PRED_LEN), :].astype(jnp.float32)      # cycle + 2*b

    # --- RevIN denormalize; lane-dense full-block store ---
    o_ref[...] = (y * stdev + means).astype(o_ref.dtype)


def gather_cycle(data, index, length):
    # RecurrentCycle.forward: data[(index[:, None] + arange(length)) % cycle_len]
    gi = (index[:, None] + jnp.arange(length, dtype=index.dtype)[None, :]) % CYCLE_LEN
    return data[gi]                                          # (B, length, C)


def _plan_tiling(n, lane=LANE, tile_max=TILE_MAX):
    """Pick (tile_n, n_pad).  Grid = n_pad // tile_n.

    - Tiny N  -> one full-width step (no per-step overhead, v5e/v6e friendly).
    - Else    -> aim for exactly 2 parallel steps (one per v7x TensorCore),
                 capped at tile_max lanes per step.
    """
    n_lane = ((n + lane - 1) // lane) * lane
    if n_lane <= lane:
        return lane, lane
    half = ((n_lane // 2 + lane - 1) // lane) * lane
    tile = min(half, tile_max)
    n_pad = ((n_lane + tile - 1) // tile) * tile
    return tile, n_pad


@jax.jit
def cycletrend_forward(x, cycle_index, cycle_data, w, b):
    B, S, C = x.shape
    P = PRED_LEN
    N = B * C

    # Single RecurrentCycle gather over the whole S+P window (tiny (7, C) table).
    cq_full = gather_cycle(cycle_data, cycle_index, S + P)               # (B, S+P, C)

    # Lane-dense, time-major layout: columns = batch*channel.
    xf = jnp.transpose(x, (1, 0, 2)).reshape(S, N)
    cq = jnp.transpose(cq_full, (1, 0, 2)).reshape(S + P, N)
    # Fold the doubled bias (both heads share W, b) into the prediction-window rows.
    cq = cq.at[S:].add((2.0 * b)[:, None])

    tile_n, n_pad = _plan_tiling(N)
    if n_pad != N:
        padw = ((0, 0), (0, n_pad - N))
        xf = jnp.pad(xf, padw)     # zero columns: var=0 -> rsqrt(eps) finite, no NaNs
        cq = jnp.pad(cq, padw)

    grid = n_pad // tile_n
    cost = pl.CostEstimate(
        flops=2 * P * S * n_pad + 10 * S * n_pad + 4 * P * n_pad,
        transcendentals=n_pad,
        bytes_accessed=4 * (S * n_pad + (S + P) * n_pad + P * S + P * n_pad),
    )

    grid_spec = pltpu.PrefetchScalarGridSpec(
        num_scalar_prefetch=0,
        grid=(grid,),
        in_specs=[
            pl.BlockSpec((S, tile_n), lambda i: (0, i)),       # x slab
            pl.BlockSpec((S + P, tile_n), lambda i: (0, i)),   # fused cycle (+2b) slab
            pl.BlockSpec((P, S), lambda i: (0, 0)),            # head weight (resident)
        ],
        out_specs=pl.BlockSpec((P, tile_n), lambda i: (0, i)),
    )
    y = pl.pallas_call(
        cycletrend_kernel,
        out_shape=jax.ShapeDtypeStruct((P, n_pad), x.dtype),
        grid_spec=grid_spec,
        compiler_params=pltpu.CompilerParams(dimension_semantics=("parallel",)),
        cost_estimate=cost,
    )(xf, cq, w)

    # Back to (B, P, C).
    return jnp.transpose(y[:, :N].reshape(P, B, C), (1, 0, 2))


def reference_forward(x, cycle_index, cycle_data, w, b):
    # Pure-JAX mirror of the PyTorch forward (including the full series_decomp path)
    # used to validate the algebraic collapse inside the kernel.
    means = jnp.mean(x, axis=1, keepdims=True)
    xc = x - means
    var = jnp.mean(xc * xc, axis=1, keepdims=True)
    stdev = jnp.sqrt(var + EPS)
    xn = xc / stdev
    xq = xn - gather_cycle(cycle_data, cycle_index, SEQ_LEN)
    pad = (MOVING_AVG - 1) // 2
    front = jnp.repeat(xq[:, 0:1, :], pad, axis=1)
    end = jnp.repeat(xq[:, -1:, :], pad, axis=1)
    padded = jnp.concatenate([front, xq, end], axis=1)
    trend = jnp.mean(
        jnp.stack([padded[:, j:j + SEQ_LEN, :] for j in range(MOVING_AVG)], 0), axis=0)
    resid = xq - trend
    # NB: the PyTorch module applies model_trend to BOTH trend and resid.
    lin = lambda z: jnp.einsum('ps,bsc->bpc', w, z) + b[None, :, None]
    y = lin(trend) + lin(resid) + gather_cycle(
        cycle_data, (cycle_index + SEQ_LEN) % CYCLE_LEN, PRED_LEN)
    y = y * stdev + means
    return y


if __name__ == "__main__":
    key = jax.random.PRNGKey(0)
    kx, kc, kw, kb, ki = jax.random.split(key, 5)
    B = 64   # B * ENC_IN = 256 -> two lane-dense (128-wide) parallel grid steps

    x = jax.random.normal(kx, (B, SEQ_LEN, ENC_IN), dtype=jnp.float32)
    cycle_index = jax.random.randint(ki, (B,), 0, CYCLE_LEN)

    # Parameters (deterministic in-script).  cycleQueue.data is zeros in the PyTorch
    # __init__; we use small nonzero values so the gather path is actually exercised.
    cycle_data = 0.1 * jax.random.normal(kc, (CYCLE_LEN, ENC_IN), dtype=jnp.float32)
    w = jax.random.normal(kw, (PRED_LEN, SEQ_LEN), dtype=jnp.float32) / jnp.sqrt(SEQ_LEN)
    b = 0.01 * jax.random.normal(kb, (PRED_LEN,), dtype=jnp.float32)

    out = cycletrend_forward(x, cycle_index, cycle_data, w, b)
    out = jax.block_until_ready(out)

    ref = reference_forward(x, cycle_index, cycle_data, w, b)
    assert out.shape == (B, PRED_LEN, ENC_IN)
    np.testing.assert_allclose(np.asarray(out), np.asarray(ref), rtol=1e-4, atol=1e-4)
    print("KERNEL_OK")
</pallas_src>

<mosaic_0001>
module attributes {stable_mosaic.version = 11 : i64} {
  func.func @cycletrend_kernel(%arg0: i32, %arg1: memref<16x128xf32, #tpu.memory_space<vmem>>, %arg2: memref<24x128xf32, #tpu.memory_space<vmem>>, %arg3: memref<8x16xf32, #tpu.memory_space<vmem>>, %arg4: memref<8x128xf32, #tpu.memory_space<vmem>>) attributes {dimension_semantics = [#tpu.dimension_semantics<parallel>], iteration_bounds = array<i64: 2>, scalar_prefetch = 0 : i64, scratch_operands = 0 : i64, tpu.core_type = #tpu.core_type<tc>, window_params = [{transform_indices = @transform_0, window_bounds = array<i64: 16, 128>}, {transform_indices = @transform_1, window_bounds = array<i64: 24, 128>}, {pipeline_mode = #tpu.pipeline_mode<synchronous>, transform_indices = @transform_2, window_bounds = array<i64: 8, 16>}, {transform_indices = @transform_3, window_bounds = array<i64: 8, 128>}]} {
    %c0 = arith.constant 0 : index
    %c0_0 = arith.constant 0 : index
    %0 = vector.load %arg1[%c0, %c0_0] : memref<16x128xf32, #tpu.memory_space<vmem>>, vector<16x128xf32>
    %cst = arith.constant dense<0.000000e+00> : vector<128xf32>
    %1 = vector.multi_reduction <add>, %0, %cst [0] : vector<16x128xf32> to vector<128xf32>
    %2 = vector.shape_cast %1 : vector<128xf32> to vector<1x128xf32>
    %cst_1 = arith.constant 1.600000e+01 : f32
    %3 = vector.broadcast %cst_1 : f32 to vector<1x128xf32>
    %4 = arith.divf %2, %3 : vector<1x128xf32>
    %5 = vector.broadcast %4 : vector<1x128xf32> to vector<16x128xf32>
    %6 = arith.subf %0, %5 : vector<16x128xf32>
    %7 = arith.mulf %6, %6 : vector<16x128xf32>
    %cst_2 = arith.constant dense<0.000000e+00> : vector<128xf32>
    %8 = vector.multi_reduction <add>, %7, %cst_2 [0] : vector<16x128xf32> to vector<128xf32>
    %9 = vector.shape_cast %8 : vector<128xf32> to vector<1x128xf32>
    %cst_3 = arith.constant 1.600000e+01 : f32
    %10 = vector.broadcast %cst_3 : f32 to vector<1x128xf32>
    %11 = arith.divf %9, %10 : vector<1x128xf32>
    %cst_4 = arith.constant 9.99999974E-6 : f32
    %12 = vector.broadcast %cst_4 : f32 to vector<1x128xf32>
    %13 = arith.addf %11, %12 : vector<1x128xf32>
    %14 = math.rsqrt %13 : vector<1x128xf32>
    %cst_5 = arith.constant 9.99999974E-6 : f32
    %15 = vector.broadcast %cst_5 : f32 to vector<1x128xf32>
    %16 = arith.addf %11, %15 : vector<1x128xf32>
    %17 = arith.mulf %16, %14 : vector<1x128xf32>
    %c0_6 = arith.constant 0 : index
    %c0_7 = arith.constant 0 : index
    %18 = vector.load %arg2[%c0_6, %c0_7] : memref<24x128xf32, #tpu.memory_space<vmem>>, vector<16x128xf32>
    %19 = vector.broadcast %14 : vector<1x128xf32> to vector<16x128xf32>
    %20 = arith.mulf %6, %19 : vector<16x128xf32>
    %21 = arith.subf %20, %18 : vector<16x128xf32>
    %c0_8 = arith.constant 0 : index
    %c0_9 = arith.constant 0 : index
    %22 = vector.load %arg3[%c0_8, %c0_9] : memref<8x16xf32, #tpu.memory_space<vmem>>, vector<8x16xf32>
    %cst_10 = arith.constant dense<0.000000e+00> : vector<8x128xf32>
    %23 = tpu.matmul %22, %21, %cst_10 {dimension_numbers = #tpu.dot_dimension_numbers<[1], [0], [0], [1], [0, 0, 1, 1], [], []>} : vector<8x16xf32>, vector<16x128xf32>, vector<8x128xf32> -> vector<8x128xf32>
    %c16 = arith.constant 16 : index
    %c0_11 = arith.constant 0 : index
    %24 = vector.load %arg2[%c16, %c0_11] : memref<24x128xf32, #tpu.memory_space<vmem>>, vector<8x128xf32>
    %25 = arith.addf %23, %24 : vector<8x128xf32>
    %26 = vector.broadcast %17 : vector<1x128xf32> to vector<8x128xf32>
    %27 = arith.mulf %25, %26 : vector<8x128xf32>
    %28 = vector.broadcast %4 : vector<1x128xf32> to vector<8x128xf32>
    %29 = arith.addf %27, %28 : vector<8x128xf32>
    %c0_12 = arith.constant 0 : index
    %c0_13 = arith.constant 0 : index
    %30 = vector.load %arg4[%c0_12, %c0_13] : memref<8x128xf32, #tpu.memory_space<vmem>>, vector<8x128xf32>
    tpu.vector_store %arg4[%c0_12, %c0_13], %29 {strides = array<i32>} : memref<8x128xf32, #tpu.memory_space<vmem>>, vector<8x128xf32>,
    return
  }
  func.func @transform_0(%arg0: i32) -> (i32, i32) {
    %c0_i32 = arith.constant 0 : i32
    %c0_i32_0 = arith.constant 0 : i32
    return %c0_i32, %arg0 : i32, i32
  }
  func.func @transform_1(%arg0: i32) -> (i32, i32) {
    %c0_i32 = arith.constant 0 : i32
    %c0_i32_0 = arith.constant 0 : i32
    return %c0_i32, %arg0 : i32, i32
  }
  func.func @transform_2(%arg0: i32) -> (i32, i32) {
    %c0_i32 = arith.constant 0 : i32
    %c0_i32_0 = arith.constant 0 : i32
    %c0_i32_1 = arith.constant 0 : i32
    return %c0_i32, %c0_i32_0 : i32, i32
  }
  func.func @transform_3(%arg0: i32) -> (i32, i32) {
    %c0_i32 = arith.constant 0 : i32
    %c0_i32_0 = arith.constant 0 : i32
    return %c0_i32, %arg0 : i32, i32
  }
}

</mosaic_0001>

<bundles_post_ra>
// kernel: cycletrend_forward.1
= control target key start
LH: loop header
LB: loop body
LE: loop exit
PB: predicated region body
PF: predicated region fallthrough
CT: control target
= control target key end

     0   :  { %s561_s12 = smov 0   ;;  %s563_s13 = smov 0   ;;  %s635_s0 = inlined_call_operand.vmem [shape: f32[16,256], index: 0, kind: input, shape index: {}]   ;;  %s636_s1 = inlined_call_operand.vmem [shape: f32[24,256], index: 1, kind: input, shape index: {}]   ;;  %s637_s2 = inlined_call_operand.vmem [shape: f32[8,16], index: 2, kind: input, shape index: {}]   ;;  %s638_s3 = inlined_call_operand.vmem [shape: f32[8,256], index: 3, kind: output, shape index: {}]  }
   0x1   :  { %s565_s14 = smov 0  }
   0x2 LB: > { %s457_s15 = sadd.s32 4294967295, %s536_s14   ;;  %s578_s16 = sadd.s32 1, %s536_s14   ;;  %s536_s14 = sphi %s565_s14, %s642_s14   ;;  %s532_s13 = sphi %s563_s13, %s641_s13   ;;  %s528_s12 = sphi %s561_s12, %s640_s12  }
   0x3   : > { %s17_s17 = ssub.s32 %s536_s14, %s578_s16  ;;  %s20_s18 = sadd.s32 1, %s532_s13 }
   0x4   : > { %p18_p0 = scmp.eq.s32.totalorder %s17_s17, 0  ;;  %p27_p1 = scmp.ne.s32.totalorder %s532_s13, %s528_s12 }
   0x5   : > { %p28_p2 = scmp.eq.s32.totalorder %s536_s14, 0  ;;  %p460_p4 = scmp.ge.s32.totalorder %s536_s14, 2 }
   0x6   : > { %s587_s19 = scalar_select %p18_p0, %s532_s13, %s20_s18  }
   0x7   : > { %p589_p3 = por %p28_p2, %p27_p1  ;;  %129 = sbr.rel (%p460_p4) target bundleno = 28 (0x1c), region = 20 }
   0xe   : > { %132 = sbr.rel (!%p589_p3) target bundleno = 21 (0x15), region = 24  ;;  %s134_s21 = sand.u32 (%p589_p3), 1, %s532_s13  }
   0xf   : > { %s462_s22 = sshll.u32 (%p589_p3), %s536_s14, 3  ;;  %s461_s23 = sshll.u32 (%p589_p3), %s134_s21, 4 }
  0x10   : > { %s138_s26 = scalar_lea.vmem (%p589_p3), %s635_s0, %s462_s22  ;;  %s136_s27 = scalar_lea.vmem (%p589_p3), [#allocation2], %s461_s23 }
  0x11   : > { %v168_v0 = vld [vmem:[%s138_s26] sm:$0xff] (%p589_p3)  ;;  %v170_v1 = vld [vmem:[%s138_s26 + $0x10] sm:$0xff] (%p589_p3) }
  0x12   : > { %169 = vst [vmem:[%s136_s27] sm:$0xff] (%p589_p3), %v168_v0  ;;  %171 = vst [vmem:[%s136_s27 + $0x8] sm:$0xff] (%p589_p3), %v170_v1 }
  0x15 PF: > { %177 = sbr.rel (!%p589_p3) target bundleno = 28 (0x1c), region = 62  ;;  %s179_s28 = sand.u32 (%p589_p3), 1, %s532_s13  }
  0x16   : > { %s463_s29 = sshll.u32 (%p589_p3), %s536_s14, 3  ;;  %s483_s30 = smul.u32 (%p589_p3), 24, %s179_s28 }
  0x17   : > { %s183_s6 = scalar_lea.vmem (%p589_p3), %s636_s1, %s463_s29 }
  0x18   : > { %v215_v2 = vld [vmem:[%s183_s6] sm:$0xff] (%p589_p3)  ;;  %v217_v3 = vld [vmem:[%s183_s6 + $0x10] sm:$0xff] (%p589_p3)  ;;  %s181_s7 = scalar_lea.vmem (%p589_p3), [#allocation3], %s483_s30 }
  0x19   : > { %v219_v4 = vld [vmem:[%s183_s6 + $0x20] sm:$0xff] (%p589_p3)  ;;  %216 = vst [vmem:[%s181_s7] sm:$0xff] (%p589_p3), %v215_v2  ;;  %218 = vst [vmem:[%s181_s7 + $0x8] sm:$0xff] (%p589_p3), %v217_v3 }
  0x1a   : > { %220 = vst [vmem:[%s181_s7 + $0x10] sm:$0xff] (%p589_p3), %v219_v4 }
  0x1c PF: > { %p464_p5 = scmp.ge.s32.totalorder %s536_s14, 1  ;;  %p225_p6 = scmp.lt.s32.totalorder %s536_s14, 3 }
  0x1e   : > { %p226_p7 = pnand %p464_p5, %p225_p6 }
  0x1f   : > { %s232_s8 = sand.u32 (!%p226_p7), 1, %s528_s12   ;;  %v538_v5 = vmov (!%p226_p7), 0.0|0.0   ;;  %vm539_vm0 = vmmov (!%p226_p7), 0   ;;  %v540_v6 = vmov (!%p226_p7), 0.0   ;;  %v301_v39 = vld [vmem:[%s637_s2] sm:$0xff] (!%p226_p7)  ;;  %vm303_vm1 = vcmask (!%p226_p7), 130048  }
  0x20   : > { %229 = sbr.rel (%p226_p7) target bundleno = 312 (0x138), region = 100  ;;  %480 = vmatprep.subr.bf16.mxu0 (!%p226_p7), %v538_v5  ;;  %s465_s9 = sshll.u32 (!%p226_p7), %s232_s8, 4  ;;  %477 = vmatprep.mubr.msk.f32.mxu0 (!%p226_p7), %vm539_vm0, %v540_v6 }
  0x21   : > { %s234_s10 = scalar_lea.vmem (!%p226_p7), [#allocation2], %s465_s9  ;;  %s484_s11 = smul.u32 (!%p226_p7), 24, %s232_s8 }
  0x22   : > { %v269_v7 = vld [vmem:[%s234_s10] sm:$0xff] (!%p226_p7)  ;;  %v270_v8 = vld [vmem:[%s234_s10 + $0x8] sm:$0xff] (!%p226_p7)  ;;  %p265_p8 = scmp.lt.s32.totalorder (!%p226_p7), %s457_s15, 1 }
  0x23   : > { %v271_v9 = vadd.f32 (!%p226_p7), %v270_v8, %v269_v7  ;;  %s241_s17 = scalar_lea.vmem (!%p226_p7), [#allocation3], %s484_s11 }
  0x24   : > { %v295_v31 = vld [vmem:[%s241_s17] sm:$0xff] (!%p226_p7)  ;;  %v296_v32 = vld [vmem:[%s241_s17 + $0x8] sm:$0xff] (!%p226_p7)  ;;  %v302_v40 = vld [vmem:[%s241_s17 + $0x10] sm:$0xff] (!%p226_p7) }
  0x25   : > { %v272_v10 = vrot.slane (!%p226_p7), %v271_v9, 4 }
  0x27   : > { %v273_v11 = vadd.f32 %v272_v10, %v271_v9  ;;  %s644_s15 = smov (!%p265_p8, %s457_s15), 1 }
  0x28   : > { %s466_s12 = sshll.u32 %s644_s15, 3 }
  0x29   : > { %v274_v12 = vrot.slane %v273_v11, 2  ;;  %s268_s23 = scalar_lea.vmem %s638_s3, %s466_s12 }
  0x2b   : > { %v275_v13 = vadd.f32 %v274_v12, %v273_v11 }
  0x2d   : > { %v276_v14 = vrot.slane %v275_v13, 1 }
  0x2f   : > { %v277_v15 = vadd.f32 %v276_v14, %v275_v13 }
  0x31   : > { %v279_v16 = vmul.f32 0.0625, %v277_v15 }
  0x33   : > { %v280_v17 = vsub.f32 %v269_v7, %v279_v16  ;;  %v281_v18 = vsub.f32 %v270_v8, %v279_v16 }
  0x35   : > { %v282_v19 = vmul.f32 %v280_v17, %v280_v17  ;;  %v283_v20 = vmul.f32 %v281_v18, %v281_v18 }
  0x37   : > { %v284_v21 = vadd.f32 %v283_v20, %v282_v19 }
  0x39   : > { %v285_v22 = vrot.slane %v284_v21, 4 }
  0x3b   : > { %v286_v23 = vadd.f32 %v285_v22, %v284_v21 }
  0x3d   : > { %v287_v24 = vrot.slane %v286_v23, 2 }
  0x3f   : > { %v288_v25 = vadd.f32 %v287_v24, %v286_v23 }
  0x41   : > { %v289_v26 = vrot.slane %v288_v25, 1 }
  0x43   : > { %v290_v27 = vadd.f32 %v289_v26, %v288_v25 }
  0x45   : > { %v291_v28 = vmul.f32 0.0625, %v290_v27 }
  0x47   : > { %v292_v29 = vadd.f32 1e-05, %v291_v28 }
  0x49   : > { %512 = vrsqrt.f32 %v292_v29 }
  0x53   : > { %v513_v30 = vpop.eup %512 }
  0x54   : > { %v297_v33 = vmul.f32 %v513_v30, %v280_v17  ;;  %v298_v34 = vmul.f32 %v513_v30, %v281_v18  ;;  %v294_v35 = vmul.f32 %v513_v30, %v292_v29 }
  0x56   : > { %v299_v36 = vsub.f32 %v297_v33, %v295_v31  ;;  %v300_v37 = vsub.f32 %v298_v34, %v296_v32 }
  0x58   : > { %v481_v38 = vpack.c.bf16 %v300_v37, %v299_v36 }
  0x5a   : > { %482 = vmatpush3.bf16.msra.mxu0 %v481_v38 }
  0x5d   : > { %478 = vmatmul.mubr.msk.f32.vlgmr.msra.gmra.mrb[0].mxu0 %vm303_vm1, %v301_v39 }
 0x130   : > { %v373_v41 = vpop.f32.mrb[0].mxu0 }
 0x131   : > { %v374_v42 = vadd.f32 %v373_v41, %v302_v40  ;;  %v479_v43 = vpop.f32.mrb[1].mxu0 }
 0x133   : > { %v377_v44 = vmul.f32 %v374_v42, %v294_v35 }
 0x135   : > { %v378_v45 = vadd.f32 %v377_v44, %v279_v16 }
 0x137   : > { %379 = vst [vmem:[%s268_s23] sm:$0xff] %v378_v45 }
 0x138 PF: > { %p10_p9 = scmp.ge.s32.totalorder %s578_s16, 4   ;;  %s640_s12 = smov %s532_s13 }
 0x139   : > { %s641_s13 = smov %s587_s19  ;;  %s642_s14 = smov %s578_s16 }
 0x13a   :  { %12 = sbr.rel (!%p10_p9) target bundleno = 2 (0x2), region = 151 }

</bundles_post_ra>
